<compile_context>
chip_gen: v6e
topology: v6e:2x2x1
jax: 0.10.0
libtpu: 0.0.40
codegen_flags: <defaults>
</compile_context>

<pallas_src>
import functools
import math

import jax
import jax.numpy as jnp
from jax import lax
from jax.experimental import pallas as pl
from jax.experimental.pallas import tpu as pltpu


def _round_up(x, m):
    return ((x + m - 1) // m) * m


# ----------------------------------------------------------------------------
# In-kernel helpers (static shapes only -> rock-solid lowering)
# ----------------------------------------------------------------------------
def _rot_right_lanes(x, s):
    """Circular right-rotation by static s along the last axis:
    out[..., j] = x[..., (j - s) % n]."""
    n = x.shape[-1]
    s = s % n
    if s == 0:
        return x
    return jnp.concatenate([x[..., n - s:], x[..., :n - s]], axis=-1)


def _rot_up_rows(x):
    """out[i, :] = x[(i + 1) % T, :]  (row roll up by one sublane)."""
    return jnp.concatenate([x[1:], x[:1]], axis=0)


# ----------------------------------------------------------------------------
# Kernel 1: fused Q/K/V/pos projections (one launch, weights resident in VMEM)
# ----------------------------------------------------------------------------
def _qkvp_proj_kernel(xq_ref, xk_ref, xv_ref, xp_ref,
                      wq_ref, wk_ref, wv_ref, wp_ref, b_ref,
                      q_ref, k_ref, v_ref, p_ref):
    def proj(x_ref, w_ref, o_ref, bias):
        y = jnp.dot(x_ref[...], w_ref[...], preferred_element_type=jnp.float32)
        if bias is not None:
            y = y + bias
        o_ref[...] = y.astype(o_ref.dtype)

    proj(xq_ref, wq_ref, q_ref, b_ref[0:1, :])
    proj(xk_ref, wk_ref, k_ref, b_ref[1:2, :])
    proj(xv_ref, wv_ref, v_ref, b_ref[2:3, :])
    proj(xp_ref, wp_ref, p_ref, None)          # pos_proj has no bias


def _fused_qkvp_proj(xq, xk, xv, xp, wq, wk, wv, wp, b_all, *, tm=512):
    rows, d_in = xq.shape
    d_out = wq.shape[1]
    tm_eff = min(tm, _round_up(rows, 8))
    rows_p = _round_up(rows, tm_eff)
    pad = rows_p - rows
    if pad:
        pad_fn = lambda a: jnp.pad(a, ((0, pad), (0, 0)))
        xq, xk, xv, xp = map(pad_fn, (xq, xk, xv, xp))

    blk = pl.BlockSpec((tm_eff, d_in), lambda i: (i, 0))
    out_blk = pl.BlockSpec((tm_eff, d_out), lambda i: (i, 0))
    res = pl.BlockSpec(memory_space=pltpu.MemorySpace.VMEM)

    # TODO(synk): add a K grid axis + f32 accumulator if d_in grows beyond ~2k
    # (resident W + double-buffered x tiles would blow the VMEM budget).
    outs = pl.pallas_call(
        _qkvp_proj_kernel,
        out_shape=tuple(jax.ShapeDtypeStruct((rows_p, d_out), xq.dtype)
                        for _ in range(4)),
        grid_spec=pltpu.PrefetchScalarGridSpec(
            num_scalar_prefetch=0,
            grid=(rows_p // tm_eff,),
            in_specs=[blk, blk, blk, blk, res, res, res, res, res],
            out_specs=[out_blk, out_blk, out_blk, out_blk],
        ),
        compiler_params=pltpu.CompilerParams(
            dimension_semantics=("parallel",),
            vmem_limit_bytes=64 * 1024 * 1024),
    )(xq, xk, xv, xp, wq, wk, wv, wp, b_all)
    return tuple(o[:rows] for o in outs)


# ----------------------------------------------------------------------------
# Kernel 2: relative attention core + fused output projection
#           (one grid step per batch element, "parallel")
# ----------------------------------------------------------------------------
def _rel_attn_kernel(*refs, num_heads, scale, has_mask):
    if has_mask:
        (q_ref, k_ref, v_ref, p_ref, m_ref,
         u_ref, vb_ref, wo_ref, bo_ref, o_ref, ctx_scr) = refs
    else:
        (q_ref, k_ref, v_ref, p_ref,
         u_ref, vb_ref, wo_ref, bo_ref, o_ref, ctx_scr) = refs
        m_ref = None

    _, T, D = q_ref.shape
    dh = D // num_heads

    q = q_ref[0]                      # (T, D)
    k = k_ref[0]
    v = v_ref[0]
    p = p_ref[0]

    # 1/sqrt(d_model) folded into the query-side operands (matmul is linear and
    # the relative shift is a permutation -> numerically identical).
    qu = (q + u_ref[...]) * scale     # + flattened per-head u bias (1, D)
    qv = (q + vb_ref[...]) * scale    # + flattened per-head v bias (1, D)

    # ---- hoisted index helpers, shared by every head -----------------------
    row = lax.broadcasted_iota(jnp.int32, (T, T), 0)
    col = lax.broadcasted_iota(jnp.int32, (T, T), 1)
    # per-row circular right-rotation amount s_i = (i + 1) % T
    shift_amt = jnp.where(row == T - 1, 0, row + 1)
    bit_sel = []
    b = 1
    while b < T:
        bit_sel.append((b, (shift_amt & b) != 0))
        b *= 2
    lower_sel = col <= row            # take rotated pos_s row i
    zero_sel = col == row + 1         # take 0
    #   else (col >= row + 2)         # take rotated pos_s row i+1
    if m_ref is not None:
        masked = m_ref[0] != 0        # (T, T) bool

    dn = (((1,), (1,)), ((), ()))     # contract last dims: (T,dh)x(T,dh)->(T,T)

    # Heads statically unrolled (small head count).  Every per-head (T, T)
    # intermediate is consumed inside its iteration; the only carried state is
    # the (T, D) f32 context scratch (written back lane-dense once at the end).
    for h in range(num_heads):
        lo = h * dh
        hi = lo + dh
        content = lax.dot_general(qu[:, lo:hi], k[:, lo:hi], dn,
                                  preferred_element_type=jnp.float32)  # (T, T)
        pos_s = lax.dot_general(qv[:, lo:hi], p[:, lo:hi], dn,
                                preferred_element_type=jnp.float32)    # (T, T)

        # --- Transformer-XL relative shift, fully vectorized ---------------
        # x[i, j] = pos_s[i, (j + T - 1 - i) % T]  via a log2(T)-stage barrel
        # rotation (static lane rotation + per-row select per stage); the
        # shifted score is then
        #   shifted[i, j] = x[i, j]          for j <= i
        #                 = 0                for j == i + 1
        #                 = x[i + 1, j]      for j >= i + 2
        # which equals the reference pad->reshape->slice trick exactly.
        x = pos_s
        for bval, sel in bit_sel:
            x = jnp.where(sel, _rot_right_lanes(x, bval), x)
        y = _rot_up_rows(x)                                  # y[i] = x[i+1]
        pos_shift = jnp.where(lower_sel, x,
                              jnp.where(zero_sel, 0.0, y))
        # --------------------------------------------------------------------

        score = content + pos_shift
        if m_ref is not None:
            score = jnp.where(masked, -1e9, score)

        # softmax; the divide goes to the EUP via the approximate reciprocal.
        mx = jnp.max(score, axis=-1, keepdims=True)
        e = jnp.exp(score - mx)
        denom = jnp.sum(e, axis=-1, keepdims=True)
        attn = e * pl.reciprocal(denom, approx=True)
        # TODO(synk): training-mode dropout on `attn` (inference identity here).

        ctx_scr[:, lo:hi] = jnp.dot(attn.astype(v.dtype), v[:, lo:hi],
                                    preferred_element_type=jnp.float32)

    # Fused output projection: ctx @ W_o + b_o, single lane-dense (T, D) store.
    out = jnp.dot(ctx_scr[...].astype(wo_ref.dtype), wo_ref[...],
                  preferred_element_type=jnp.float32) + bo_ref[...]
    o_ref[0] = out.astype(o_ref.dtype)


def relative_multi_head_attention(query, key, value, pos_embedding,
                                  wq, bq, wk, bk, wv, bv, wp, wo, bo,
                                  u_bias, v_bias, *, num_heads,
                                  mask=None, tm=512):
    """query/key/value/pos_embedding: (B, T, D). Weights in (in, out) layout."""
    B, T, D = query.shape
    assert D % num_heads == 0, "d_model % num_heads should be zero."
    rows = B * T
    scale = 1.0 / math.sqrt(D)
    dtype = query.dtype

    # ---- fused Q/K/V/pos projections (one pallas_call) ---------------------
    b_all = jnp.stack([bq, bk, bv], axis=0).astype(dtype)       # (3, D)
    q2, k2, v2, p2 = _fused_qkvp_proj(
        query.reshape(rows, D), key.reshape(rows, D), value.reshape(rows, D),
        pos_embedding.reshape(rows, D), wq, wk, wv, wp, b_all, tm=tm)
    q = q2.reshape(B, T, D)
    k = k2.reshape(B, T, D)
    v = v2.reshape(B, T, D)
    p = p2.reshape(B, T, D)

    # Flattened per-head biases: adding a (1, D) row to the (T, D) projection is
    # identical to the per-head (H, d_head) broadcast add of the PyTorch code.
    u_row = u_bias.reshape(1, D).astype(dtype)
    v_row = v_bias.reshape(1, D).astype(dtype)
    bo_row = bo.reshape(1, D)

    # ---- attention core + fused output projection (one pallas_call) --------
    blk = pl.BlockSpec((1, T, D), lambda i: (i, 0, 0))
    res = pl.BlockSpec(memory_space=pltpu.MemorySpace.VMEM)
    in_specs = [blk, blk, blk, blk]
    args = [q, k, v, p]
    has_mask = mask is not None
    if has_mask:
        mask_i8 = jnp.broadcast_to(mask, (B, T, T)).astype(jnp.int8)
        in_specs.append(pl.BlockSpec((1, T, T), lambda i: (i, 0, 0)))
        args.append(mask_i8)
    in_specs += [res, res, res, res]             # u, v biases, W_o, b_o resident
    args += [u_row, v_row, wo, bo_row]

    out = pl.pallas_call(
        functools.partial(_rel_attn_kernel, num_heads=num_heads, scale=scale,
                          has_mask=has_mask),
        out_shape=jax.ShapeDtypeStruct((B, T, D), dtype),
        grid_spec=pltpu.PrefetchScalarGridSpec(
            num_scalar_prefetch=0,
            grid=(B,),
            in_specs=in_specs,
            out_specs=pl.BlockSpec((1, T, D), lambda i: (i, 0, 0)),
            scratch_shapes=[pltpu.VMEM((T, D), jnp.float32)],   # per-head ctx
        ),
        compiler_params=pltpu.CompilerParams(
            dimension_semantics=("parallel",),
            vmem_limit_bytes=64 * 1024 * 1024),
    )(*args)
    return out


# ----------------------------------------------------------------------------
# Pure-JAX reference (mirrors the PyTorch forward exactly)
# ----------------------------------------------------------------------------
def _relative_shift_ref(pos_score):
    B, H, T1, T2 = pos_score.shape
    zeros = jnp.zeros((B, H, T1, 1), pos_score.dtype)
    padded = jnp.concatenate([zeros, pos_score], axis=-1)
    padded = padded.reshape(B, H, T2 + 1, T1)
    return padded[:, :, 1:].reshape(B, H, T1, T2)


def reference(query, key, value, pos_embedding, wq, bq, wk, bk, wv, bv, wp,
              wo, bo, u_bias, v_bias, *, num_heads, mask=None):
    B, T, D = query.shape
    d_head = D // num_heads
    q = (query @ wq + bq).reshape(B, T, num_heads, d_head)
    k = (key @ wk + bk).reshape(B, T, num_heads, d_head).transpose(0, 2, 1, 3)
    v = (value @ wv + bv).reshape(B, T, num_heads, d_head).transpose(0, 2, 1, 3)
    p = (pos_embedding @ wp).reshape(B, T, num_heads, d_head)
    content = jnp.einsum('bihd,bhjd->bhij', q + u_bias, k)
    pos_score = jnp.einsum('bihd,bjhd->bhij', q + v_bias, p)
    pos_score = _relative_shift_ref(pos_score)
    score = (content + pos_score) / math.sqrt(D)
    if mask is not None:
        score = jnp.where(mask[:, None], -1e9, score)
    attn = jax.nn.softmax(score, axis=-1)
    ctx = jnp.einsum('bhij,bhjd->bihd', attn, v).reshape(B, T, D)
    return ctx @ wo + bo


def _xavier_uniform(key, shape, dtype=jnp.float32):
    limit = math.sqrt(6.0 / (shape[0] + shape[1]))
    return jax.random.uniform(key, shape, dtype, minval=-limit, maxval=limit)


if __name__ == "__main__":
    B, T = 2, 16
    D = 128          # d_model (multiple of 128 -> all stores lane-dense)
    H = 4            # num_heads
    Dh = D // H

    root = jax.random.PRNGKey(0)
    ks = jax.random.split(root, 11)

    query = jax.random.normal(ks[0], (B, T, D), jnp.float32)
    key_in = jax.random.normal(ks[1], (B, T, D), jnp.float32)
    value = jax.random.normal(ks[2], (B, T, D), jnp.float32)
    pos_embedding = jax.random.normal(ks[3], (B, T, D), jnp.float32)

    # Parameters: weights stored as (in, out) (PyTorch Linear computes x @ W^T,
    # identical math); biases init to zero; u/v biases xavier-uniform.
    wq = _xavier_uniform(ks[4], (D, D)); bq = jnp.zeros((D,), jnp.float32)
    wk = _xavier_uniform(ks[5], (D, D)); bk = jnp.zeros((D,), jnp.float32)
    wv = _xavier_uniform(ks[6], (D, D)); bv = jnp.zeros((D,), jnp.float32)
    wp = _xavier_uniform(ks[7], (D, D))                    # pos_proj has no bias
    wo = _xavier_uniform(ks[8], (D, D)); bo = jnp.zeros((D,), jnp.float32)
    u_bias = _xavier_uniform(ks[9], (H, Dh))
    v_bias = _xavier_uniform(ks[10], (H, Dh))

    out = relative_multi_head_attention(
        query, key_in, value, pos_embedding,
        wq, bq, wk, bk, wv, bv, wp, wo, bo, u_bias, v_bias,
        num_heads=H, mask=None)
    out = jax.block_until_ready(out)

    ref = reference(query, key_in, value, pos_embedding,
                    wq, bq, wk, bk, wv, bv, wp, wo, bo, u_bias, v_bias,
                    num_heads=H, mask=None)

    assert out.shape == (B, T, D)
    assert jnp.allclose(out, ref, atol=5e-3, rtol=5e-3), "mismatch vs reference"
    print("KERNEL_OK")
</pallas_src>

<mosaic_0001>
module attributes {stable_mosaic.version = 11 : i64} {
  func.func @_qkvp_proj_kernel(%arg0: i32, %arg1: memref<32x128xf32, #tpu.memory_space<vmem>>, %arg2: memref<32x128xf32, #tpu.memory_space<vmem>>, %arg3: memref<32x128xf32, #tpu.memory_space<vmem>>, %arg4: memref<32x128xf32, #tpu.memory_space<vmem>>, %arg5: memref<128x128xf32, #tpu.memory_space<vmem>>, %arg6: memref<128x128xf32, #tpu.memory_space<vmem>>, %arg7: memref<128x128xf32, #tpu.memory_space<vmem>>, %arg8: memref<128x128xf32, #tpu.memory_space<vmem>>, %arg9: memref<3x128xf32, #tpu.memory_space<vmem>>, %arg10: memref<32x128xf32, #tpu.memory_space<vmem>>, %arg11: memref<32x128xf32, #tpu.memory_space<vmem>>, %arg12: memref<32x128xf32, #tpu.memory_space<vmem>>, %arg13: memref<32x128xf32, #tpu.memory_space<vmem>>) attributes {dimension_semantics = [#tpu.dimension_semantics<parallel>], iteration_bounds = array<i64: 1>, scalar_prefetch = 0 : i64, scratch_operands = 0 : i64, tpu.core_type = #tpu.core_type<tc>, window_params = [{transform_indices = @transform_0, window_bounds = array<i64: 32, 128>}, {transform_indices = @transform_1, window_bounds = array<i64: 32, 128>}, {transform_indices = @transform_2, window_bounds = array<i64: 32, 128>}, {transform_indices = @transform_3, window_bounds = array<i64: 32, 128>}, {pipeline_mode = #tpu.pipeline_mode<synchronous>, transform_indices = @transform_4, window_bounds = array<i64: 128, 128>}, {pipeline_mode = #tpu.pipeline_mode<synchronous>, transform_indices = @transform_5, window_bounds = array<i64: 128, 128>}, {pipeline_mode = #tpu.pipeline_mode<synchronous>, transform_indices = @transform_6, window_bounds = array<i64: 128, 128>}, {pipeline_mode = #tpu.pipeline_mode<synchronous>, transform_indices = @transform_7, window_bounds = array<i64: 128, 128>}, {pipeline_mode = #tpu.pipeline_mode<synchronous>, transform_indices = @transform_8, window_bounds = array<i64: 3, 128>}, {transform_indices = @transform_9, window_bounds = array<i64: 32, 128>}, {transform_indices = @transform_10, window_bounds = array<i64: 32, 128>}, {transform_indices = @transform_11, window_bounds = array<i64: 32, 128>}, {transform_indices = @transform_12, window_bounds = array<i64: 32, 128>}]} {
    %c0 = arith.constant 0 : index
    %c0_0 = arith.constant 0 : index
    %0 = vector.load %arg9[%c0, %c0_0] : memref<3x128xf32, #tpu.memory_space<vmem>>, vector<1x128xf32>
    %c0_1 = arith.constant 0 : index
    %c0_2 = arith.constant 0 : index
    %1 = vector.load %arg1[%c0_1, %c0_2] : memref<32x128xf32, #tpu.memory_space<vmem>>, vector<32x128xf32>
    %c0_3 = arith.constant 0 : index
    %c0_4 = arith.constant 0 : index
    %2 = vector.load %arg5[%c0_3, %c0_4] : memref<128x128xf32, #tpu.memory_space<vmem>>, vector<128x128xf32>
    %cst = arith.constant dense<0.000000e+00> : vector<32x128xf32>
    %3 = tpu.matmul %1, %2, %cst {dimension_numbers = #tpu.dot_dimension_numbers<[1], [0], [0], [1], [0, 0, 1, 1], [], []>} : vector<32x128xf32>, vector<128x128xf32>, vector<32x128xf32> -> vector<32x128xf32>
    %4 = vector.broadcast %0 : vector<1x128xf32> to vector<32x128xf32>
    %5 = arith.addf %3, %4 : vector<32x128xf32>
    %c0_5 = arith.constant 0 : index
    %c0_6 = arith.constant 0 : index
    %6 = vector.load %arg10[%c0_5, %c0_6] : memref<32x128xf32, #tpu.memory_space<vmem>>, vector<32x128xf32>
    tpu.vector_store %arg10[%c0_5, %c0_6], %5 {strides = array<i32>} : memref<32x128xf32, #tpu.memory_space<vmem>>, vector<32x128xf32>,
    %c1 = arith.constant 1 : index
    %c0_7 = arith.constant 0 : index
    %7 = vector.load %arg9[%c1, %c0_7] : memref<3x128xf32, #tpu.memory_space<vmem>>, vector<1x128xf32>
    %c0_8 = arith.constant 0 : index
    %c0_9 = arith.constant 0 : index
    %8 = vector.load %arg2[%c0_8, %c0_9] : memref<32x128xf32, #tpu.memory_space<vmem>>, vector<32x128xf32>
    %c0_10 = arith.constant 0 : index
    %c0_11 = arith.constant 0 : index
    %9 = vector.load %arg6[%c0_10, %c0_11] : memref<128x128xf32, #tpu.memory_space<vmem>>, vector<128x128xf32>
    %cst_12 = arith.constant dense<0.000000e+00> : vector<32x128xf32>
    %10 = tpu.matmul %8, %9, %cst_12 {dimension_numbers = #tpu.dot_dimension_numbers<[1], [0], [0], [1], [0, 0, 1, 1], [], []>} : vector<32x128xf32>, vector<128x128xf32>, vector<32x128xf32> -> vector<32x128xf32>
    %11 = vector.broadcast %7 : vector<1x128xf32> to vector<32x128xf32>
    %12 = arith.addf %10, %11 : vector<32x128xf32>
    %c0_13 = arith.constant 0 : index
    %c0_14 = arith.constant 0 : index
    %13 = vector.load %arg11[%c0_13, %c0_14] : memref<32x128xf32, #tpu.memory_space<vmem>>, vector<32x128xf32>
    tpu.vector_store %arg11[%c0_13, %c0_14], %12 {strides = array<i32>} : memref<32x128xf32, #tpu.memory_space<vmem>>, vector<32x128xf32>,
    %c2 = arith.constant 2 : index
    %c0_15 = arith.constant 0 : index
    %14 = vector.load %arg9[%c2, %c0_15] : memref<3x128xf32, #tpu.memory_space<vmem>>, vector<1x128xf32>
    %c0_16 = arith.constant 0 : index
    %c0_17 = arith.constant 0 : index
    %15 = vector.load %arg3[%c0_16, %c0_17] : memref<32x128xf32, #tpu.memory_space<vmem>>, vector<32x128xf32>
    %c0_18 = arith.constant 0 : index
    %c0_19 = arith.constant 0 : index
    %16 = vector.load %arg7[%c0_18, %c0_19] : memref<128x128xf32, #tpu.memory_space<vmem>>, vector<128x128xf32>
    %cst_20 = arith.constant dense<0.000000e+00> : vector<32x128xf32>
    %17 = tpu.matmul %15, %16, %cst_20 {dimension_numbers = #tpu.dot_dimension_numbers<[1], [0], [0], [1], [0, 0, 1, 1], [], []>} : vector<32x128xf32>, vector<128x128xf32>, vector<32x128xf32> -> vector<32x128xf32>
    %18 = vector.broadcast %14 : vector<1x128xf32> to vector<32x128xf32>
    %19 = arith.addf %17, %18 : vector<32x128xf32>
    %c0_21 = arith.constant 0 : index
    %c0_22 = arith.constant 0 : index
    %20 = vector.load %arg12[%c0_21, %c0_22] : memref<32x128xf32, #tpu.memory_space<vmem>>, vector<32x128xf32>
    tpu.vector_store %arg12[%c0_21, %c0_22], %19 {strides = array<i32>} : memref<32x128xf32, #tpu.memory_space<vmem>>, vector<32x128xf32>,
    %c0_23 = arith.constant 0 : index
    %c0_24 = arith.constant 0 : index
    %21 = vector.load %arg4[%c0_23, %c0_24] : memref<32x128xf32, #tpu.memory_space<vmem>>, vector<32x128xf32>
    %c0_25 = arith.constant 0 : index
    %c0_26 = arith.constant 0 : index
    %22 = vector.load %arg8[%c0_25, %c0_26] : memref<128x128xf32, #tpu.memory_space<vmem>>, vector<128x128xf32>
    %cst_27 = arith.constant dense<0.000000e+00> : vector<32x128xf32>
    %23 = tpu.matmul %21, %22, %cst_27 {dimension_numbers = #tpu.dot_dimension_numbers<[1], [0], [0], [1], [0, 0, 1, 1], [], []>} : vector<32x128xf32>, vector<128x128xf32>, vector<32x128xf32> -> vector<32x128xf32>
    %c0_28 = arith.constant 0 : index
    %c0_29 = arith.constant 0 : index
    %24 = vector.load %arg13[%c0_28, %c0_29] : memref<32x128xf32, #tpu.memory_space<vmem>>, vector<32x128xf32>
    tpu.vector_store %arg13[%c0_28, %c0_29], %23 {strides = array<i32>} : memref<32x128xf32, #tpu.memory_space<vmem>>, vector<32x128xf32>,
    return
  }
  func.func @transform_0(%arg0: i32) -> (i32, i32) {
    %c0_i32 = arith.constant 0 : i32
    %c0_i32_0 = arith.constant 0 : i32
    return %arg0, %c0_i32 : i32, i32
  }
  func.func @transform_1(%arg0: i32) -> (i32, i32) {
    %c0_i32 = arith.constant 0 : i32
    %c0_i32_0 = arith.constant 0 : i32
    return %arg0, %c0_i32 : i32, i32
  }
  func.func @transform_2(%arg0: i32) -> (i32, i32) {
    %c0_i32 = arith.constant 0 : i32
    %c0_i32_0 = arith.constant 0 : i32
    return %arg0, %c0_i32 : i32, i32
  }
  func.func @transform_3(%arg0: i32) -> (i32, i32) {
    %c0_i32 = arith.constant 0 : i32
    %c0_i32_0 = arith.constant 0 : i32
    return %arg0, %c0_i32 : i32, i32
  }
  func.func @transform_4(%arg0: i32) -> (i32, i32) {
    %c0_i32 = arith.constant 0 : i32
    %c0_i32_0 = arith.constant 0 : i32
    %c0_i32_1 = arith.constant 0 : i32
    return %c0_i32, %c0_i32_0 : i32, i32
  }
  func.func @transform_5(%arg0: i32) -> (i32, i32) {
    %c0_i32 = arith.constant 0 : i32
    %c0_i32_0 = arith.constant 0 : i32
    %c0_i32_1 = arith.constant 0 : i32
    return %c0_i32, %c0_i32_0 : i32, i32
  }
  func.func @transform_6(%arg0: i32) -> (i32, i32) {
    %c0_i32 = arith.constant 0 : i32
    %c0_i32_0 = arith.constant 0 : i32
    %c0_i32_1 = arith.constant 0 : i32
    return %c0_i32, %c0_i32_0 : i32, i32
  }
  func.func @transform_7(%arg0: i32) -> (i32, i32) {
    %c0_i32 = arith.constant 0 : i32
    %c0_i32_0 = arith.constant 0 : i32
    %c0_i32_1 = arith.constant 0 : i32
    return %c0_i32, %c0_i32_0 : i32, i32
  }
  func.func @transform_8(%arg0: i32) -> (i32, i32) {
    %c0_i32 = arith.constant 0 : i32
    %c0_i32_0 = arith.constant 0 : i32
    %c0_i32_1 = arith.constant 0 : i32
    return %c0_i32, %c0_i32_0 : i32, i32
  }
  func.func @transform_9(%arg0: i32) -> (i32, i32) {
    %c0_i32 = arith.constant 0 : i32
    %c0_i32_0 = arith.constant 0 : i32
    return %arg0, %c0_i32 : i32, i32
  }
  func.func @transform_10(%arg0: i32) -> (i32, i32) {
    %c0_i32 = arith.constant 0 : i32
    %c0_i32_0 = arith.constant 0 : i32
    return %arg0, %c0_i32 : i32, i32
  }
  func.func @transform_11(%arg0: i32) -> (i32, i32) {
    %c0_i32 = arith.constant 0 : i32
    %c0_i32_0 = arith.constant 0 : i32
    return %arg0, %c0_i32 : i32, i32
  }
  func.func @transform_12(%arg0: i32) -> (i32, i32) {
    %c0_i32 = arith.constant 0 : i32
    %c0_i32_0 = arith.constant 0 : i32
    return %arg0, %c0_i32 : i32, i32
  }
}

</mosaic_0001>

<bundles_post_ra>
// kernel: tpu_custom_call.1
= control target key start
LH: loop header
LB: loop body
LE: loop exit
PB: predicated region body
PF: predicated region fallthrough
CT: control target
= control target key end

     0   :  { %18 = vsyncpa [#allocation3], 0  ;;  %s1332_s0 = inlined_call_operand.hbm [shape: f32[32,128], index: 0, kind: input, shape index: {}]   ;;  %s1333_s1 = inlined_call_operand.hbm [shape: f32[32,128], index: 1, kind: input, shape index: {}]   ;;  %s1334_s2 = inlined_call_operand.hbm [shape: f32[32,128], index: 2, kind: input, shape index: {}]   ;;  %s1335_s3 = inlined_call_operand.hbm [shape: f32[32,128], index: 3, kind: input, shape index: {}]   ;;  %s1336_s4 = inlined_call_operand.hbm [shape: f32[128,128], index: 4, kind: input, shape index: {}]   ;;  %s1337_s5 = inlined_call_operand.hbm [shape: f32[128,128], index: 5, kind: input, shape index: {}]   ;;  %s1338_s6 = inlined_call_operand.hbm [shape: f32[128,128], index: 6, kind: input, shape index: {}]   ;;  %s1339_s7 = inlined_call_operand.hbm [shape: f32[128,128], index: 7, kind: input, shape index: {}]   ;;  %s1340_s8 = inlined_call_operand.vmem [shape: f32[3,128], index: 8, kind: input, shape index: {}]   ;;  %s1341_s9 = inlined_call_operand.hbm [shape: f32[32,128], index: 9, kind: output, shape index: {0}]   ;;  %s1342_s10 = inlined_call_operand.hbm [shape: f32[32,128], index: 10, kind: output, shape index: {1}]   ;;  %s1343_s11 = inlined_call_operand.hbm [shape: f32[32,128], index: 11, kind: output, shape index: {2}]   ;;  %s1344_s12 = inlined_call_operand.hbm [shape: f32[32,128], index: 12, kind: output, shape index: {3}]  }
   0x1   :  { %19 = vsyncpa [#allocation6], 0 }
   0x2   :  { %20 = vsyncpa [#allocation9], 0 }
   0x3   :  { %21 = vsyncpa [#allocation12], 0 }
   0x4   :  { %22 = vsyncpa [#allocation15], 0 }
   0x5   :  { %23 = vsyncpa [#allocation4], 0 }
   0x6   :  { %24 = vsyncpa [#allocation18], 0 }
   0x7   :  { %25 = vsyncpa [#allocation21], 0  ;;  %s1172_s21 = smov [#allocation5]   ;;  %s1173_s23 = smov [#allocation8]  }
   0x8   :  { %s43_s22 = sshll.u32 %s1172_s21, 4  ;;  %s67_s24 = sshll.u32 %s1173_s23, 4  ;;  %s44_s22 = int_to_ptr.vmem [resolvable:$true] %s43_s22  ;;  %s68_s24 = int_to_ptr.vmem [resolvable:$true] %s67_s24 }
   0x9   :  { %s924_s25 = scalar_lea.vmem %s44_s22, 512  ;;  %p929_p1 = scmp.lt.s32.totalorder %s44_s22, %s44_s22 }
   0xa   :  { %p925_p0 = scmp.ne.s32.totalorder %s44_s22, %s924_s25  ;;  %p930_p2 = scmp.lt.s32.totalorder %s924_s25, %s924_s25 }
   0xc   :  { %p931_p3 = por %p930_p2, %p929_p1 }
   0xe   :  { %p932_p4 = pnand %p931_p3, %p925_p0 }
  0x10   :  { %935 = shalt.err (!%p932_p4)
}
  0x11   :  { %s1174_s26 = smov 128   ;;  %s1175_s27 = smov 8  }
  0x12   :  { %49 = dma.hbm_to_vmem [thread:$0]  %s1333_s1, 512, %s44_s22, [#allocation6], %s1174_s26, %s1174_s26, %s1175_s27  }
  0x13   :  { %s944_s30 = scalar_lea.vmem %s68_s24, 512  ;;  %p949_p6 = scmp.lt.s32.totalorder %s68_s24, %s68_s24 }
  0x14   :  { %p945_p5 = scmp.ne.s32.totalorder %s68_s24, %s944_s30  ;;  %p950_p7 = scmp.lt.s32.totalorder %s944_s30, %s944_s30 }
  0x16   :  { %p951_p8 = por %p950_p7, %p949_p6 }
  0x18   :  { %p952_p9 = pnand %p951_p8, %p945_p5 }
  0x1a   :  { %955 = shalt.err (!%p952_p9)
}
  0x1b   :  { %73 = dma.hbm_to_vmem [thread:$0]  %s1335_s3, 512, %s68_s24, [#allocation9], %s1174_s26, %s1174_s26, %s1175_s27  }
  0x1c   :  { %s1176_s15 = smov [#allocation11]   ;;  %s1177_s17 = smov [#allocation2]  }
  0x1d   :  { %s91_s16 = sshll.u32 %s1176_s15, 4  ;;  %s31_s18 = sshll.u32 %s1177_s17, 4  ;;  %s92_s16 = int_to_ptr.vmem [resolvable:$true] %s91_s16  ;;  %s32_s18 = int_to_ptr.vmem [resolvable:$true] %s31_s18 }
  0x1e   :  { %s964_s1 = scalar_lea.vmem %s92_s16, 2048  ;;  %p969_p11 = scmp.lt.s32.totalorder %s92_s16, %s92_s16 }
  0x1f   :  { %p965_p10 = scmp.ne.s32.totalorder %s92_s16, %s964_s1  ;;  %p970_p12 = scmp.lt.s32.totalorder %s964_s1, %s964_s1 }
  0x21   :  { %p971_p13 = por %p970_p12, %p969_p11 }
  0x23   :  { %p972_p0 = pnand %p971_p13, %p965_p10 }
  0x25   :  { %975 = shalt.err (!%p972_p0)
}
  0x26   :  { %97 = dma.hbm_to_vmem [thread:$0]  %s1337_s5, 2048, %s92_s16, [#allocation12], %s1174_s26, %s1174_s26, %s1175_s27  }
  0x27   :  { %s984_s3 = scalar_lea.vmem %s32_s18, 512  ;;  %p989_p2 = scmp.lt.s32.totalorder %s32_s18, %s32_s18 }
  0x28   :  { %p985_p1 = scmp.ne.s32.totalorder %s32_s18, %s984_s3  ;;  %p990_p3 = scmp.lt.s32.totalorder %s984_s3, %s984_s3 }
  0x2a   :  { %p991_p4 = por %p990_p3, %p989_p2 }
  0x2c   :  { %p992_p5 = pnand %p991_p4, %p985_p1 }
  0x2e   :  { %995 = shalt.err (!%p992_p5)
}
  0x2f   :  { %37 = dma.hbm_to_vmem [thread:$0]  %s1332_s0, 512, %s32_s18, [#allocation3], %s1174_s26, %s1174_s26, %s1175_s27  }
  0x30   :  { %s1178_s23 = smov [#allocation7]   ;;  %s1179_s25 = smov [#allocation10]  }
  0x31   :  { %s55_s24 = sshll.u32 %s1178_s23, 4  ;;  %s79_s28 = sshll.u32 %s1179_s25, 4  ;;  %s56_s24 = int_to_ptr.vmem [resolvable:$true] %s55_s24  ;;  %s80_s28 = int_to_ptr.vmem [resolvable:$true] %s79_s28 }
  0x32   :  { %s1004_s5 = scalar_lea.vmem %s56_s24, 512  ;;  %p1009_p7 = scmp.lt.s32.totalorder %s56_s24, %s56_s24 }
  0x33   :  { %p1005_p6 = scmp.ne.s32.totalorder %s56_s24, %s1004_s5  ;;  %p1010_p8 = scmp.lt.s32.totalorder %s1004_s5, %s1004_s5 }
  0x35   :  { %p1011_p9 = por %p1010_p8, %p1009_p7 }
  0x37   :  { %p1012_p10 = pnand %p1011_p9, %p1005_p6 }
  0x39   :  { %1015 = shalt.err (!%p1012_p10)
}
  0x3a   :  { %61 = dma.hbm_to_vmem [thread:$0]  %s1334_s2, 512, %s56_s24, [#allocation6], %s1174_s26, %s1174_s26, %s1175_s27  }
  0x3b   :  { %s1024_s0 = scalar_lea.vmem %s80_s28, 2048  ;;  %p1029_p12 = scmp.lt.s32.totalorder %s80_s28, %s80_s28 }
  0x3c   :  { %p1025_p11 = scmp.ne.s32.totalorder %s80_s28, %s1024_s0  ;;  %p1030_p13 = scmp.lt.s32.totalorder %s1024_s0, %s1024_s0 }
  0x3e   :  { %p1031_p0 = por %p1030_p13, %p1029_p12 }
  0x40   :  { %p1032_p1 = pnand %p1031_p0, %p1025_p11 }
  0x42   :  { %1035 = shalt.err (!%p1032_p1)
}
  0x43   :  { %85 = dma.hbm_to_vmem [thread:$0]  %s1336_s4, 2048, %s80_s28, [#allocation9], %s1174_s26, %s1174_s26, %s1175_s27  }
  0x44   :  { %s1180_s15 = smov [#allocation13]   ;;  %s1181_s17 = smov [#allocation14]  }
  0x45   :  { %s103_s16 = sshll.u32 %s1180_s15, 4  ;;  %s115_s18 = sshll.u32 %s1181_s17, 4  ;;  %s104_s16 = int_to_ptr.vmem [resolvable:$true] %s103_s16  ;;  %s116_s18 = int_to_ptr.vmem [resolvable:$true] %s115_s18 }
  0x46   :  { %s1044_s2 = scalar_lea.vmem %s104_s16, 2048  ;;  %p1049_p3 = scmp.lt.s32.totalorder %s104_s16, %s104_s16 }
  0x47   :  { %p1045_p2 = scmp.ne.s32.totalorder %s104_s16, %s1044_s2  ;;  %p1050_p4 = scmp.lt.s32.totalorder %s1044_s2, %s1044_s2 }
  0x49   :  { %p1051_p5 = por %p1050_p4, %p1049_p3 }
  0x4b   :  { %p1052_p6 = pnand %p1051_p5, %p1045_p2 }
  0x4d   :  { %1055 = shalt.err (!%p1052_p6)
}
  0x4e   :  { %109 = dma.hbm_to_vmem [thread:$0]  %s1338_s6, 2048, %s104_s16, [#allocation12], %s1174_s26, %s1174_s26, %s1175_s27  }
  0x4f   :  { %s1064_s4 = scalar_lea.vmem %s116_s18, 2048  ;;  %p1069_p8 = scmp.lt.s32.totalorder %s116_s18, %s116_s18 }
  0x50   :  { %p1065_p7 = scmp.ne.s32.totalorder %s116_s18, %s1064_s4  ;;  %p1070_p9 = scmp.lt.s32.totalorder %s1064_s4, %s1064_s4 }
  0x52   :  { %p1071_p10 = por %p1070_p9, %p1069_p8 }
  0x54   :  { %p1072_p11 = pnand %p1071_p10, %p1065_p7 }
  0x56   :  { %1075 = shalt.err (!%p1072_p11)
}
  0x57   :  { %121 = dma.hbm_to_vmem [thread:$0]  %s1339_s7, 2048, %s116_s18, [#allocation15], %s1174_s26, %s1174_s26, %s1175_s27  }
  0x58   :  { %1156 = dma.done.wait [#allocation3], 512  }
  0x59   :  { %1157 = vsyncadd [#allocation3], 4294966784 }
  0x5a   :  { %1158 = dma.done.wait [#allocation6], 1024  }
  0x5b   :  { %1159 = vsyncadd [#allocation6], 4294966272 }
  0x5c   :  { %1160 = dma.done.wait [#allocation9], 2560  }
  0x5d   :  { %1161 = vsyncadd [#allocation9], 4294964736 }
  0x5e   :  { %1162 = dma.done.wait [#allocation12], 4096  }
  0x5f   :  { %1163 = vsyncadd [#allocation12], 4294963200 }
  0x60   :  { %1164 = dma.done.wait [#allocation15], 2048  }
  0x61   :  { %1165 = vsyncadd [#allocation15], 4294965248  ;;  %v168_v0 = vld [vmem:[#allocation10 + $0x78] sm:$0xff]  ;;  %v167_v2 = vld [vmem:[#allocation10 + $0x70] sm:$0xff]  ;;  %s1182_s23 = smov [#allocation16]   ;;  %s1183_s25 = smov [#allocation17]  }
  0x62   :  { %v282_v1 = vld [vmem:[#allocation11 + $0x78] sm:$0xff]  ;;  %750 = vmatprep.subr.mxu0 %v168_v0  ;;  %v281_v3 = vld [vmem:[#allocation11 + $0x70] sm:$0xff]  ;;  %v166_v4 = vld [vmem:[#allocation10 + $0x68] sm:$0xff]  ;;  %s604_s24 = sshll.u32 %s1182_s23, 4  ;;  %s616_s28 = sshll.u32 %s1183_s25, 4  ;;  %s605_s24 = int_to_ptr.vmem [resolvable:$true] %s604_s24  ;;  %s617_s28 = int_to_ptr.vmem [resolvable:$true] %s616_s28 }
  0x63   :  { %788 = vmatprep.subr.mxu1 %v282_v1  ;;  %751 = vmatpush3.msra.mxu0 %v168_v0  ;;  %v280_v5 = vld [vmem:[#allocation11 + $0x68] sm:$0xff]  ;;  %v165_v6 = vld [vmem:[#allocation10 + $0x60] sm:$0xff]  ;;  %v164_v8 = vld [vmem:[#allocation10 + $0x58] sm:$0xff]  ;;  %s1076_s5 = scalar_lea.vmem %s605_s24, 512  ;;  %p1081_p13 = scmp.lt.s32.totalorder %s605_s24, %s605_s24 }
  0x64   :  { %789 = vmatpush3.msra.mxu1 %v282_v1  ;;  %752 = vmatprep.subr.mxu0 %v167_v2  ;;  %v279_v7 = vld [vmem:[#allocation11 + $0x60] sm:$0xff]  ;;  %v278_v9 = vld [vmem:[#allocation11 + $0x58] sm:$0xff]  ;;  %v163_v10 = vld [vmem:[#allocation10 + $0x50] sm:$0xff]  ;;  %p1077_p12 = scmp.ne.s32.totalorder %s605_s24, %s1076_s5  ;;  %p1082_p0 = scmp.lt.s32.totalorder %s1076_s5, %s1076_s5 }
  0x65   :  { %790 = vmatprep.subr.mxu1 %v281_v3  ;;  %753 = vmatpush3.msra.mxu0 %v167_v2  ;;  %v277_v11 = vld [vmem:[#allocation11 + $0x50] sm:$0xff]  ;;  %v162_v12 = vld [vmem:[#allocation10 + $0x48] sm:$0xff]  ;;  %v161_v14 = vld [vmem:[#allocation10 + $0x40] sm:$0xff] }
  0x66   :  { %791 = vmatpush3.msra.mxu1 %v281_v3  ;;  %754 = vmatprep.subr.mxu0 %v166_v4  ;;  %v276_v13 = vld [vmem:[#allocation11 + $0x48] sm:$0xff]  ;;  %v275_v15 = vld [vmem:[#allocation11 + $0x40] sm:$0xff]  ;;  %v160_v16 = vld [vmem:[#allocation10 + $0x38] sm:$0xff]  ;;  %p1083_p1 = por %p1082_p0, %p1081_p13 }
  0x67   :  { %792 = vmatprep.subr.mxu1 %v280_v5  ;;  %755 = vmatpush3.msra.mxu0 %v166_v4  ;;  %v274_v17 = vld [vmem:[#allocation11 + $0x38] sm:$0xff]  ;;  %v159_v18 = vld [vmem:[#allocation10 + $0x30] sm:$0xff]  ;;  %v158_v20 = vld [vmem:[#allocation10 + $0x28] sm:$0xff] }
  0x68   :  { %793 = vmatpush3.msra.mxu1 %v280_v5  ;;  %756 = vmatprep.subr.mxu0 %v165_v6  ;;  %v273_v19 = vld [vmem:[#allocation11 + $0x30] sm:$0xff]  ;;  %v272_v21 = vld [vmem:[#allocation11 + $0x28] sm:$0xff]  ;;  %v157_v22 = vld [vmem:[#allocation10 + $0x20] sm:$0xff]  ;;  %p1084_p2 = pnand %p1083_p1, %p1077_p12 }
  0x69   :  { %794 = vmatprep.subr.mxu1 %v279_v7  ;;  %757 = vmatpush3.msra.mxu0 %v165_v6  ;;  %v271_v23 = vld [vmem:[#allocation11 + $0x20] sm:$0xff]  ;;  %v156_v24 = vld [vmem:[#allocation10 + $0x18] sm:$0xff]  ;;  %v155_v26 = vld [vmem:[#allocation10 + $0x10] sm:$0xff] }
  0x6a   :  { %795 = vmatpush3.msra.mxu1 %v279_v7  ;;  %758 = vmatprep.subr.mxu0 %v164_v8  ;;  %v270_v25 = vld [vmem:[#allocation11 + $0x18] sm:$0xff]  ;;  %v269_v27 = vld [vmem:[#allocation11 + $0x10] sm:$0xff]  ;;  %v154_v28 = vld [vmem:[#allocation10 + $0x8] sm:$0xff] }
  0x6b   :  { %796 = vmatprep.subr.mxu1 %v278_v9  ;;  %759 = vmatpush3.msra.mxu0 %v164_v8  ;;  %v268_v29 = vld [vmem:[#allocation11 + $0x8] sm:$0xff]  ;;  %v153_v30 = vld [vmem:[#allocation10] sm:$0xff]  ;;  %v396_v35 = vld [vmem:[#allocation13 + $0x78] sm:$0xff] }
  0x6c   :  { %797 = vmatpush3.msra.mxu1 %v278_v9  ;;  %760 = vmatprep.subr.mxu0 %v163_v10  ;;  %v267_v31 = vld [vmem:[#allocation11] sm:$0xff]  ;;  %v150_v33 = vld [vmem:[#allocation2 + $0x8] sm:$0xff]  ;;  %v509_v36 = vld [vmem:[#allocation14 + $0x78] sm:$0xff] }
  0x6d   :  { %798 = vmatprep.subr.mxu1 %v277_v11  ;;  %761 = vmatpush3.msra.mxu0 %v163_v10  ;;  %v149_v32 = vld [vmem:[#allocation2] sm:$0xff]  ;;  %v264_v37 = vld [vmem:[#allocation5 + $0x8] sm:$0xff]  ;;  %v395_v38 = vld [vmem:[#allocation13 + $0x70] sm:$0xff] }
  0x6e   :  { %799 = vmatpush3.msra.mxu1 %v277_v11  ;;  %762 = vmatprep.subr.mxu0 %v162_v12  ;;  %v263_v34 = vld [vmem:[#allocation5] sm:$0xff]  ;;  %v508_v39 = vld [vmem:[#allocation14 + $0x70] sm:$0xff]  ;;  %v394_v40 = vld [vmem:[#allocation13 + $0x68] sm:$0xff] }
  0x6f   :  { %800 = vmatprep.subr.mxu1 %v276_v13  ;;  %763 = vmatpush3.msra.mxu0 %v162_v12  ;;  %v507_v41 = vld [vmem:[#allocation14 + $0x68] sm:$0xff]  ;;  %v393_v42 = vld [vmem:[#allocation13 + $0x60] sm:$0xff]  ;;  %v392_v44 = vld [vmem:[#allocation13 + $0x58] sm:$0xff] }
  0x70   :  { %801 = vmatpush3.msra.mxu1 %v276_v13  ;;  %764 = vmatprep.subr.mxu0 %v161_v14  ;;  %v506_v43 = vld [vmem:[#allocation14 + $0x60] sm:$0xff]  ;;  %v505_v45 = vld [vmem:[#allocation14 + $0x58] sm:$0xff]  ;;  %v391_v46 = vld [vmem:[#allocation13 + $0x50] sm:$0xff] }
  0x71   :  { %802 = vmatprep.subr.mxu1 %v275_v15  ;;  %765 = vmatpush3.msra.mxu0 %v161_v14  ;;  %v504_v47 = vld [vmem:[#allocation14 + $0x50] sm:$0xff]  ;;  %v390_v48 = vld [vmem:[#allocation13 + $0x48] sm:$0xff]  ;;  %v389_v50 = vld [vmem:[#allocation13 + $0x40] sm:$0xff] }
  0x72   :  { %803 = vmatpush3.msra.mxu1 %v275_v15  ;;  %766 = vmatprep.subr.mxu0 %v160_v16  ;;  %v503_v49 = vld [vmem:[#allocation14 + $0x48] sm:$0xff]  ;;  %v502_v51 = vld [vmem:[#allocation14 + $0x40] sm:$0xff]  ;;  %v388_v52 = vld [vmem:[#allocation13 + $0x38] sm:$0xff] }
  0x73   :  { %804 = vmatprep.subr.mxu1 %v274_v17  ;;  %767 = vmatpush3.msra.mxu0 %v160_v16  ;;  %v501_v53 = vld [vmem:[#allocation14 + $0x38] sm:$0xff]  ;;  %v387_v54 = vld [vmem:[#allocation13 + $0x30] sm:$0xff]  ;;  %v386_v56 = vld [vmem:[#allocation13 + $0x28] sm:$0xff] }
  0x74   :  { %805 = vmatpush3.msra.mxu1 %v274_v17  ;;  %768 = vmatprep.subr.mxu0 %v159_v18  ;;  %v500_v55 = vld [vmem:[#allocation14 + $0x30] sm:$0xff]  ;;  %v499_v57 = vld [vmem:[#allocation14 + $0x28] sm:$0xff]  ;;  %v385_v58 = vld [vmem:[#allocation13 + $0x20] sm:$0xff] }
  0x75   :  { %806 = vmatprep.subr.mxu1 %v273_v19  ;;  %769 = vmatpush3.msra.mxu0 %v159_v18  ;;  %v498_v59 = vld [vmem:[#allocation14 + $0x20] sm:$0xff]  ;;  %v384_v60 = vld [vmem:[#allocation13 + $0x18] sm:$0xff]  ;;  %v151_v62 = vld [vmem:[#allocation2 + $0x10] sm:$0xff] }
  0x76   :  { %807 = vmatpush3.msra.mxu1 %v273_v19  ;;  %770 = vmatprep.subr.mxu0 %v158_v20  ;;  %v497_v61 = vld [vmem:[#allocation14 + $0x18] sm:$0xff]  ;;  %v383_v0 = vld [vmem:[#allocation13 + $0x10] sm:$0xff]  ;;  %v382_v3 = vld [vmem:[#allocation13 + $0x8] sm:$0xff] }
  0x77   :  { %808 = vmatprep.subr.mxu1 %v272_v21  ;;  %771 = vmatpush3.msra.mxu0 %v158_v20  ;;  %v152_v63 = vld [vmem:[#allocation2 + $0x18] sm:$0xff]  ;;  %v496_v1 = vld [vmem:[#allocation14 + $0x10] sm:$0xff]  ;;  %v495_v5 = vld [vmem:[#allocation14 + $0x8] sm:$0xff] }
  0x78   :  { %809 = vmatpush3.msra.mxu1 %v272_v21  ;;  %772 = vmatprep.subr.mxu0 %v157_v22  ;;  %v265_v2 = vld [vmem:[#allocation5 + $0x10] sm:$0xff]  ;;  %v266_v4 = vld [vmem:[#allocation5 + $0x18] sm:$0xff]  ;;  %v381_v6 = vld [vmem:[#allocation13] sm:$0xff] }
  0x79   :  { %810 = vmatprep.subr.mxu1 %v271_v23  ;;  %773 = vmatpush3.msra.mxu0 %v157_v22  ;;  %v494_v7 = vld [vmem:[#allocation14] sm:$0xff]  ;;  %v378_v10 = vld [vmem:[#allocation7 + $0x8] sm:$0xff]  ;;  %v379_v12 = vld [vmem:[#allocation7 + $0x10] sm:$0xff] }
  0x7a   :  { %811 = vmatpush3.msra.mxu1 %v271_v23  ;;  %774 = vmatprep.subr.mxu0 %v156_v24  ;;  %v377_v8 = vld [vmem:[#allocation7] sm:$0xff]  ;;  %v491_v11 = vld [vmem:[#allocation8 + $0x8] sm:$0xff]  ;;  %v492_v13 = vld [vmem:[#allocation8 + $0x10] sm:$0xff] }
  0x7b   :  { %812 = vmatprep.subr.mxu1 %v270_v25  ;;  %775 = vmatpush3.msra.mxu0 %v156_v24  ;;  %v490_v9 = vld [vmem:[#allocation8] sm:$0xff]  ;;  %v380_v14 = vld [vmem:[#allocation7 + $0x18] sm:$0xff] }
  0x7c   :  { %813 = vmatpush3.msra.mxu1 %v270_v25  ;;  %776 = vmatprep.subr.mxu0 %v155_v26  ;;  %v493_v15 = vld [vmem:[#allocation8 + $0x18] sm:$0xff]  ;;  %v667_v16 = vld [vmem:[%s1340_s8] ss:$0 sm:$0xff]  ;;  %v668_v18 = vld [vmem:[%s1340_s8 + $0x1] ss:$0 sm:$0xff] }
  0x7d   :  { %814 = vmatprep.subr.mxu1 %v269_v27  ;;  %777 = vmatpush3.msra.mxu0 %v155_v26 }
  0x7e   :  { %815 = vmatpush3.msra.mxu1 %v269_v27  ;;  %778 = vmatprep.subr.mxu0 %v154_v28 }
  0x7f   :  { %816 = vmatprep.subr.mxu1 %v268_v29  ;;  %779 = vmatpush3.msra.mxu0 %v154_v28 }
  0x80   :  { %817 = vmatpush3.msra.mxu1 %v268_v29  ;;  %780 = vmatprep.subr.mxu0 %v153_v30 }
  0x81   :  { %818 = vmatprep.subr.mxu1 %v267_v31  ;;  %781 = vmatpush3.msra.mxu0 %v153_v30 }
  0x82   :  { %782 = vmatprep.mubr.f32.mxu0 %v149_v32  ;;  %819 = vmatpush3.msra.mxu1 %v267_v31 }
  0x83   :  { %783 = vmatmul.mubr.f32.vlgmr.msra.gmra.mxu0 %v150_v33  ;;  %820 = vmatprep.mubr.f32.mxu1 %v263_v34 }
  0x84   :  { %826 = vmatprep.subr.mxu0 %v396_v35  ;;  %864 = vmatprep.subr.mxu1 %v509_v36 }
  0x85   :  { %821 = vmatmul.mubr.f32.vlgmr.msra.gmra.mxu1 %v264_v37  ;;  %827 = vmatpush3.msra.mxu0 %v396_v35 }
  0x86   :  { %865 = vmatpush3.msra.mxu1 %v509_v36  ;;  %828 = vmatprep.subr.mxu0 %v395_v38 }
  0x87   :  { %866 = vmatprep.subr.mxu1 %v508_v39  ;;  %829 = vmatpush3.msra.mxu0 %v395_v38 }
  0x88   :  { %867 = vmatpush3.msra.mxu1 %v508_v39  ;;  %830 = vmatprep.subr.mxu0 %v394_v40 }
  0x89   :  { %868 = vmatprep.subr.mxu1 %v507_v41  ;;  %831 = vmatpush3.msra.mxu0 %v394_v40 }
  0x8a   :  { %869 = vmatpush3.msra.mxu1 %v507_v41  ;;  %832 = vmatprep.subr.mxu0 %v393_v42 }
  0x8b   :  { %870 = vmatprep.subr.mxu1 %v506_v43  ;;  %833 = vmatpush3.msra.mxu0 %v393_v42 }
  0x8c   :  { %871 = vmatpush3.msra.mxu1 %v506_v43  ;;  %834 = vmatprep.subr.mxu0 %v392_v44 }
  0x8d   :  { %872 = vmatprep.subr.mxu1 %v505_v45  ;;  %835 = vmatpush3.msra.mxu0 %v392_v44 }
  0x8e   :  { %873 = vmatpush3.msra.mxu1 %v505_v45  ;;  %836 = vmatprep.subr.mxu0 %v391_v46 }
  0x8f   :  { %874 = vmatprep.subr.mxu1 %v504_v47  ;;  %837 = vmatpush3.msra.mxu0 %v391_v46 }
  0x90   :  { %875 = vmatpush3.msra.mxu1 %v504_v47  ;;  %838 = vmatprep.subr.mxu0 %v390_v48 }
  0x91   :  { %876 = vmatprep.subr.mxu1 %v503_v49  ;;  %839 = vmatpush3.msra.mxu0 %v390_v48 }
  0x92   :  { %877 = vmatpush3.msra.mxu1 %v503_v49  ;;  %840 = vmatprep.subr.mxu0 %v389_v50 }
  0x93   :  { %878 = vmatprep.subr.mxu1 %v502_v51  ;;  %841 = vmatpush3.msra.mxu0 %v389_v50 }
  0x94   :  { %879 = vmatpush3.msra.mxu1 %v502_v51  ;;  %842 = vmatprep.subr.mxu0 %v388_v52 }
  0x95   :  { %880 = vmatprep.subr.mxu1 %v501_v53  ;;  %843 = vmatpush3.msra.mxu0 %v388_v52 }
  0x96   :  { %881 = vmatpush3.msra.mxu1 %v501_v53  ;;  %844 = vmatprep.subr.mxu0 %v387_v54 }
  0x97   :  { %882 = vmatprep.subr.mxu1 %v500_v55  ;;  %845 = vmatpush3.msra.mxu0 %v387_v54 }
  0x98   :  { %883 = vmatpush3.msra.mxu1 %v500_v55  ;;  %846 = vmatprep.subr.mxu0 %v386_v56 }
  0x99   :  { %884 = vmatprep.subr.mxu1 %v499_v57  ;;  %847 = vmatpush3.msra.mxu0 %v386_v56 }
  0x9a   :  { %885 = vmatpush3.msra.mxu1 %v499_v57  ;;  %848 = vmatprep.subr.mxu0 %v385_v58 }
  0x9b   :  { %886 = vmatprep.subr.mxu1 %v498_v59  ;;  %849 = vmatpush3.msra.mxu0 %v385_v58 }
  0x9c   :  { %887 = vmatpush3.msra.mxu1 %v498_v59  ;;  %850 = vmatprep.subr.mxu0 %v384_v60 }
  0x9d   :  { %888 = vmatprep.subr.mxu1 %v497_v61  ;;  %785 = vmatprep.mubr.f32.mxu0 %v151_v62 }
  0x9e   :  { %851 = vmatpush3.msra.mxu0 %v384_v60  ;;  %889 = vmatpush3.msra.mxu1 %v497_v61 }
  0x9f   :  { %786 = vmatmul.mubr.f32.gmra.mxu0 %v152_v63  ;;  %852 = vmatprep.subr.mxu0 %v383_v0 }
  0xa0   :  { %890 = vmatprep.subr.mxu1 %v496_v1  ;;  %823 = vmatprep.mubr.f32.mxu1 %v265_v2 }
  0xa1   :  { %853 = vmatpush3.msra.mxu0 %v383_v0  ;;  %891 = vmatpush3.msra.mxu1 %v496_v1 }
  0xa2   :  { %854 = vmatprep.subr.mxu0 %v382_v3  ;;  %824 = vmatmul.mubr.f32.gmra.mxu1 %v266_v4 }
  0xa3   :  { %892 = vmatprep.subr.mxu1 %v495_v5  ;;  %855 = vmatpush3.msra.mxu0 %v382_v3 }
  0xa4   :  { %893 = vmatpush3.msra.mxu1 %v495_v5  ;;  %856 = vmatprep.subr.mxu0 %v381_v6 }
  0xa5   :  { %894 = vmatprep.subr.mxu1 %v494_v7  ;;  %857 = vmatpush3.msra.mxu0 %v381_v6 }
  0xa6   :  { %858 = vmatprep.mubr.f32.mxu0 %v377_v8  ;;  %895 = vmatpush3.msra.mxu1 %v494_v7 }
  0xa7   :  { %896 = vmatprep.mubr.f32.mxu1 %v490_v9  ;;  %859 = vmatmul.mubr.f32.vlgmr.msra.gmra.mxu0 %v378_v10 }
  0xa8   :  { %897 = vmatmul.mubr.f32.vlgmr.msra.gmra.mxu1 %v491_v11  ;;  %861 = vmatprep.mubr.f32.mxu0 %v379_v12 }
  0xa9   :  { %899 = vmatprep.mubr.f32.mxu1 %v492_v13 }
  0xab   :  { %862 = vmatmul.mubr.f32.gmra.mxu0 %v380_v14 }
  0xac   :  { %900 = vmatmul.mubr.f32.gmra.mxu1 %v493_v15 }
 0x143   :  { %v784_v17 = vpop.f32.mrf.mxu0 }
 0x144   :  { %v245_v19 = vadd.f32 %v784_v17, %v667_v16 }
 0x145   :  { %v822_v20 = vpop.f32.mrf.mxu1  ;;  %v239_v21 = vpop.f32.mrf.mxu0 }
 0x146   :  { %259 = vst [vmem:[#allocation16 + $0x8] sm:$0xff] %v245_v19  ;;  %v359_v22 = vadd.f32 %v822_v20, %v668_v18  ;;  %v240_v23 = vadd.f32 %v667_v16, %v239_v21 }
 0x147   :  { %v353_v24 = vpop.f32.mrf.mxu1 }
 0x148   :  { %373 = vst [vmem:[#allocation17 + $0x8] sm:$0xff] %v359_v22  ;;  %258 = vst [vmem:[#allocation16] sm:$0xff] %v240_v23  ;;  %v354_v25 = vadd.f32 %v668_v18, %v353_v24 }
 0x14a   :  { %372 = vst [vmem:[#allocation17] sm:$0xff] %v354_v25 }
 0x15f   :  { %v787_v26 = vpop.f32.mrf.mxu0 }
 0x160   :  { %v255_v27 = vadd.f32 %v787_v26, %v667_v16 }
 0x161   :  { %v249_v28 = vpop.f32.mrf.mxu0 }
 0x162   :  { %261 = vst [vmem:[#allocation16 + $0x18] sm:$0xff] %v255_v27  ;;  %v250_v29 = vadd.f32 %v667_v16, %v249_v28  ;;  %v825_v30 = vpop.f32.mrf.mxu1 }
 0x163   :  { %v369_v31 = vadd.f32 %v825_v30, %v668_v18 }
 0x164   :  { %260 = vst [vmem:[#allocation16 + $0x10] sm:$0xff] %v250_v29  ;;  %v363_v32 = vpop.f32.mrf.mxu1 }
 0x165   :  { %1087 = shalt.err (!%p1084_p2)
}
 0x166   :  { %610 = dma.vmem_to_hbm [thread:$0]  %s605_s24, 512, %s1341_s9, [#allocation4], %s1174_s26, %s1174_s26, %s1175_s27   ;;  %375 = vst [vmem:[#allocation17 + $0x18] sm:$0xff] %v369_v31  ;;  %v364_v33 = vadd.f32 %v668_v18, %v363_v32 }
 0x167   :  { %v669_v34 = vld [vmem:[%s1340_s8 + $0x2] ss:$0 sm:$0xff]  ;;  %v860_v35 = vpop.f32.mrf.mxu0  ;;  %s1096_s14 = scalar_lea.vmem %s617_s28, 512  ;;  %p1101_p4 = scmp.lt.s32.totalorder %s617_s28, %s617_s28 }
 0x168   :  { %374 = vst [vmem:[#allocation17 + $0x10] sm:$0xff] %v364_v33  ;;  %v898_v36 = vpop.f32.mrf.mxu1  ;;  %v473_v37 = vadd.f32 %v860_v35, %v669_v34  ;;  %p1097_p3 = scmp.ne.s32.totalorder %s617_s28, %s1096_s14  ;;  %p1102_p5 = scmp.lt.s32.totalorder %s1096_s14, %s1096_s14 }
 0x169   :  { %596 = vst [vmem:[#allocation20 + $0x8] sm:$0xff] %v898_v36 }
 0x16a   :  { %p1103_p6 = por %p1102_p5, %p1101_p4 }
 0x16c   :  { %p1104_p7 = pnand %p1103_p6, %p1097_p3 }
 0x16e   :  { %1107 = shalt.err (!%p1104_p7)
}
 0x16f   :  { %622 = dma.vmem_to_hbm [thread:$0]  %s617_s28, 512, %s1342_s10, [#allocation18], %s1174_s26, %s1174_s26, %s1175_s27   ;;  %v467_v38 = vpop.f32.mrf.mxu0  ;;  %v576_v39 = vpop.f32.mrf.mxu1  ;;  %487 = vst [vmem:[#allocation19 + $0x8] sm:$0xff] %v473_v37 }
 0x170   :  { %s1184_s8 = smov [#allocation20]   ;;  %v468_v40 = vadd.f32 %v669_v34, %v467_v38  ;;  %595 = vst [vmem:[#allocation20] sm:$0xff] %v576_v39  ;;  %s1185_s17 = smov [#allocation19]  }
 0x171   :  { %s640_s16 = sshll.u32 %s1184_s8, 4  ;;  %v863_v41 = vpop.f32.mrf.mxu0  ;;  %v901_v42 = vpop.f32.mrf.mxu1  ;;  %s628_s18 = sshll.u32 %s1185_s17, 4  ;;  %s641_s16 = int_to_ptr.vmem [resolvable:$true] %s640_s16  ;;  %s629_s18 = int_to_ptr.vmem [resolvable:$true] %s628_s18 }
 0x172   :  { %486 = vst [vmem:[#allocation19] sm:$0xff] %v468_v40  ;;  %v483_v43 = vadd.f32 %v863_v41, %v669_v34  ;;  %598 = vst [vmem:[#allocation20 + $0x18] sm:$0xff] %v901_v42  ;;  %s1116_s10 = scalar_lea.vmem %s641_s16, 512  ;;  %p1121_p9 = scmp.lt.s32.totalorder %s641_s16, %s641_s16 }
 0x173   :  { %v477_v44 = vpop.f32.mrf.mxu0  ;;  %v586_v45 = vpop.f32.mrf.mxu1  ;;  %p1117_p8 = scmp.ne.s32.totalorder %s641_s16, %s1116_s10  ;;  %p1122_p10 = scmp.lt.s32.totalorder %s1116_s10, %s1116_s10 }
 0x174   :  { %489 = vst [vmem:[#allocation19 + $0x18] sm:$0xff] %v483_v43  ;;  %v478_v46 = vadd.f32 %v669_v34, %v477_v44  ;;  %597 = vst [vmem:[#allocation20 + $0x10] sm:$0xff] %v586_v45 }
 0x175   :  { %p1123_p11 = por %p1122_p10, %p1121_p9 }
 0x177   :  { %p1124_p12 = pnand %p1123_p11, %p1117_p8 }
 0x179   :  { %1127 = shalt.err (!%p1124_p12)
}
 0x17a   :  { %646 = dma.vmem_to_hbm [thread:$0]  %s641_s16, 512, %s1344_s12, [#allocation21], %s1174_s26, %s1174_s26, %s1175_s27   ;;  %488 = vst [vmem:[#allocation19 + $0x10] sm:$0xff] %v478_v46 }
 0x17b   :  { %s1136_s19 = scalar_lea.vmem %s629_s18, 512  ;;  %p1141_p0 = scmp.lt.s32.totalorder %s629_s18, %s629_s18 }
 0x17c   :  { %p1137_p13 = scmp.ne.s32.totalorder %s629_s18, %s1136_s19  ;;  %p1142_p1 = scmp.lt.s32.totalorder %s1136_s19, %s1136_s19 }
 0x17e   :  { %p1143_p2 = por %p1142_p1, %p1141_p0 }
 0x180   :  { %p1144_p3 = pnand %p1143_p2, %p1137_p13 }
 0x182   :  { %1147 = shalt.err (!%p1144_p3)
}
 0x183   :  { %634 = dma.vmem_to_hbm [thread:$0]  %s629_s18, 512, %s1343_s11, [#allocation18], %s1174_s26, %s1174_s26, %s1175_s27  }
 0x184   :  { %1166 = dma.done.wait [#allocation4], 512  }
 0x185   :  { %1167 = vsyncadd [#allocation4], 4294966784 }
 0x186   :  { %1168 = dma.done.wait [#allocation18], 1024  }
 0x187   :  { %1169 = vsyncadd [#allocation18], 4294966272 }
 0x188   :  { %1170 = dma.done.wait [#allocation21], 512  }
 0x189   :  { %1171 = vsyncadd [#allocation21], 4294966784 }
 0x18a   :  { %659 = vsyncpa [#allocation3], 1 }
 0x18b   :  { %660 = vsyncpa [#allocation6], 1 }
 0x18c   :  { %661 = vsyncpa [#allocation9], 1 }
 0x18d   :  { %662 = vsyncpa [#allocation12], 1 }
 0x18e   :  { %663 = vsyncpa [#allocation15], 1 }
 0x18f   :  { %664 = vsyncpa [#allocation4], 1 }
 0x190   :  { %665 = vsyncpa [#allocation18], 1 }
 0x191   :  { %666 = vsyncpa [#allocation21], 1 }

</bundles_post_ra>
